<compile_context>
chip_gen: v7x
topology: tpu7x:2x2x1
jax: 0.10.0
libtpu: 0.0.40
codegen_flags: <defaults>
</compile_context>

<pallas_src>
import functools
import math

import jax
import jax.numpy as jnp
from jax.experimental import pallas as pl
from jax.experimental.pallas import tpu as pltpu

STATE_DIM = 3      # Pendulum-v1 observation dim
ACTION_DIM = 1     # Pendulum-v1 action dim
HIDDEN = 256
MAX_ACTION = 2.0   # Pendulum-v1 action high

_MAX_TB = 2048              # batch-tile cap (MXU-filling, VMEM-safe on v7x)
_SINGLE_PROGRAM_MAX_B = 1024


def _round_up(x, m):
    return ((x + m - 1) // m) * m


@functools.lru_cache(maxsize=None)
def _bf16_activations():
    """Use bf16 activations only on generations with native bf16 VPU (v6e/v7x)."""
    try:
        kind = jax.devices()[0].device_kind.lower()
    except Exception:
        return False
    return ("v6" in kind) or ("v7" in kind)


def _make_actor_kernel(bf16_acts):
    def kernel(x_ref, w1_ref, b1_ref, w2_ref, b2_ref, w3t_ref, b3_ref, out_ref):
        x = x_ref[...]
        w1 = w1_ref[...]

        # fc1 (K=3): three VPU broadcast-FMAs instead of a padded-K MXU pass.
        # Exact f32 numerics.
        h1 = (x[:, 0:1] * w1[0:1, :]
              + x[:, 1:2] * w1[1:2, :]
              + x[:, 2:3] * w1[2:3, :]
              + b1_ref[...])
        h1 = jnp.maximum(h1, 0.0)

        # fc2: bf16 operands on the MXU (native single pass), f32 accumulation.
        h2 = jnp.dot(h1.astype(jnp.bfloat16), w2_ref[...],
                     preferred_element_type=jnp.float32) + b2_ref[...]
        h2 = jnp.maximum(h2, 0.0)

        # fc3 (256 -> 1): VPU multiply + lane reduction against the lane-dense
        # (1, 256) transposed weight (no degenerate (256,1) MXU matmul).
        if bf16_acts:
            # v6e/v7x only: bf16 multiply (native VPU), f32 accumulation.
            prod = (h2.astype(jnp.bfloat16)
                    * w3t_ref[...].astype(jnp.bfloat16)).astype(jnp.float32)
        else:
            # v5e path: keep everything f32 (no bf16 VALU/EUP).
            prod = h2 * w3t_ref[...]
        a = jnp.sum(prod, axis=-1, keepdims=True) + b3_ref[0, 0]
        out_ref[...] = (jnp.tanh(a) * MAX_ACTION).astype(out_ref.dtype)

    return kernel


def actor_forward(state, params):
    """state: (B, STATE_DIM) float32 -> (B, ACTION_DIM) float32."""
    w1, b1, w2, b2, w3t, b3 = params
    B = state.shape[0]

    if B <= _SINGLE_PROGRAM_MAX_B:
        # Small / inference batch: one program, full-array blocks.
        tb = B
    else:
        # Training batch: 256-multiple tiles, capped at 2048, and always
        # >= 2 programs so v7x's two TensorCores both get work.
        tb = min(_MAX_TB, _round_up(pl.cdiv(B, 2), 256))

    b_pad = _round_up(B, tb)
    x = state if b_pad == B else jnp.pad(state, ((0, b_pad - B), (0, 0)))
    grid = (b_pad // tb,)

    const = lambda shape: pl.BlockSpec(shape, lambda i: (0, 0))

    out = pl.pallas_call(
        _make_actor_kernel(_bf16_activations()),
        out_shape=jax.ShapeDtypeStruct((b_pad, ACTION_DIM), jnp.float32),
        grid=grid,
        in_specs=[
            pl.BlockSpec((tb, STATE_DIM), lambda i: (i, 0)),     # state tile
            const((STATE_DIM, HIDDEN)),                          # w1 (f32)
            const((1, HIDDEN)),                                  # b1
            const((HIDDEN, HIDDEN)),                             # w2 (bf16)
            const((1, HIDDEN)),                                  # b2
            const((1, HIDDEN)),                                  # w3^T (1,256)
            pl.BlockSpec(memory_space=pltpu.MemorySpace.SMEM),   # b3 (1,1)
        ],
        out_specs=pl.BlockSpec((tb, ACTION_DIM), lambda i: (i, 0)),
        compiler_params=pltpu.CompilerParams(
            dimension_semantics=("parallel",)),
    )(x, w1, b1, w2, b2, w3t, b3)

    return out if b_pad == B else out[:B]


def init_actor_params(key):
    """Deterministic init mimicking PyTorch nn.Linear default (U(-1/sqrt(fan_in), +))."""
    def linear(key, fan_in, fan_out):
        kw, kb = jax.random.split(key)
        bound = 1.0 / math.sqrt(fan_in)
        # Stored as (in, out) = transpose of PyTorch's (out, in) weight.
        w = jax.random.uniform(kw, (fan_in, fan_out), jnp.float32, -bound, bound)
        b = jax.random.uniform(kb, (1, fan_out), jnp.float32, -bound, bound)
        return w, b

    k1, k2, k3 = jax.random.split(key, 3)
    w1, b1 = linear(k1, STATE_DIM, HIDDEN)
    w2, b2 = linear(k2, HIDDEN, HIDDEN)
    w3, b3 = linear(k3, HIDDEN, ACTION_DIM)

    # w2 stored in bf16 (halves the dominant weight DMA; native MXU operand).
    w2 = w2.astype(jnp.bfloat16)
    # fc3 weight pre-transposed to lane-dense (1, HIDDEN).
    w3t = w3.T  # (1, 256)
    return (w1, b1, w2, b2, w3t, b3)


def actor_reference_kernel(state, params, bf16_acts=None):
    """Matches the kernel's numerics (bf16 fc2 operands; bf16 fc3 on v6e/v7x)."""
    if bf16_acts is None:
        bf16_acts = _bf16_activations()
    w1, b1, w2, b2, w3t, b3 = params
    h1 = jnp.maximum(state[:, 0:1] * w1[0:1, :]
                     + state[:, 1:2] * w1[1:2, :]
                     + state[:, 2:3] * w1[2:3, :] + b1, 0.0)
    h2 = jnp.maximum(
        jnp.dot(h1.astype(jnp.bfloat16), w2, preferred_element_type=jnp.float32) + b2,
        0.0)
    if bf16_acts:
        prod = (h2.astype(jnp.bfloat16) * w3t.astype(jnp.bfloat16)).astype(jnp.float32)
    else:
        prod = h2 * w3t
    a = jnp.sum(prod, axis=-1, keepdims=True) + b3[0, 0]
    return jnp.tanh(a) * MAX_ACTION


def actor_reference_f32(state, params):
    """All-f32 semantics of the original PyTorch module (given the stored weights)."""
    w1, b1, w2, b2, w3t, b3 = params
    h1 = jnp.maximum(state @ w1 + b1, 0.0)
    h2 = jnp.maximum(h1 @ w2.astype(jnp.float32) + b2, 0.0)
    a = h2 @ w3t.astype(jnp.float32).T + b3
    return jnp.tanh(a) * MAX_ACTION


if __name__ == "__main__":
    key = jax.random.PRNGKey(0)
    k_params, k_state = jax.random.split(key)

    params = init_actor_params(k_params)

    # Small (inference-size) batch: single program, full-array blocks.
    state_small = jax.random.normal(k_state, (8, STATE_DIM), jnp.float32)
    out_small = jax.block_until_ready(actor_forward(state_small, params))
    assert out_small.shape == (8, ACTION_DIM)
    assert jnp.allclose(out_small, actor_reference_kernel(state_small, params),
                        atol=1e-3, rtol=1e-3), "mismatch vs kernel-numerics reference"
    assert jnp.allclose(out_small, actor_reference_f32(state_small, params),
                        atol=5e-2, rtol=5e-2), "mismatch vs f32 reference"

    # Ragged training-size batch: exercises padding + cdiv grid (>= 2 programs).
    state_big = jax.random.normal(k_state, (1500, STATE_DIM), jnp.float32)
    out_big = jax.block_until_ready(actor_forward(state_big, params))
    assert out_big.shape == (1500, ACTION_DIM)
    assert jnp.allclose(out_big, actor_reference_kernel(state_big, params),
                        atol=1e-3, rtol=1e-3), "mismatch vs kernel-numerics reference (B=1500)"
    assert jnp.allclose(out_big, actor_reference_f32(state_big, params),
                        atol=5e-2, rtol=5e-2), "mismatch vs f32 reference (B=1500)"

    print("KERNEL_OK")
</pallas_src>

<mosaic_0001>
module attributes {stable_mosaic.version = 11 : i64} {
  func.func @kernel(%arg0: i32, %arg1: memref<8x3xf32, #tpu.memory_space<vmem>>, %arg2: memref<3x256xf32, #tpu.memory_space<vmem>>, %arg3: memref<1x256xf32, #tpu.memory_space<vmem>>, %arg4: memref<256x256xbf16, #tpu.memory_space<vmem>>, %arg5: memref<1x256xf32, #tpu.memory_space<vmem>>, %arg6: memref<1x256xf32, #tpu.memory_space<vmem>>, %arg7: memref<1x1xf32, #tpu.memory_space<smem>>, %arg8: memref<8x1xf32, #tpu.memory_space<vmem>>) attributes {dimension_semantics = [#tpu.dimension_semantics<parallel>], iteration_bounds = array<i64: 1>, scalar_prefetch = 0 : i64, scratch_operands = 0 : i64, tpu.core_type = #tpu.core_type<tc>, window_params = [{transform_indices = @transform_0, window_bounds = array<i64: 8, 3>}, {pipeline_mode = #tpu.pipeline_mode<synchronous>, transform_indices = @transform_1, window_bounds = array<i64: 3, 256>}, {pipeline_mode = #tpu.pipeline_mode<synchronous>, transform_indices = @transform_2, window_bounds = array<i64: 1, 256>}, {pipeline_mode = #tpu.pipeline_mode<synchronous>, transform_indices = @transform_3, window_bounds = array<i64: 256, 256>}, {pipeline_mode = #tpu.pipeline_mode<synchronous>, transform_indices = @transform_4, window_bounds = array<i64: 1, 256>}, {pipeline_mode = #tpu.pipeline_mode<synchronous>, transform_indices = @transform_5, window_bounds = array<i64: 1, 256>}, {transform_indices = @transform_6, window_bounds = array<i64: 1, 1>}, {transform_indices = @transform_7, window_bounds = array<i64: 8, 1>}]} {
    %c0 = arith.constant 0 : index
    %c0_0 = arith.constant 0 : index
    %0 = vector.load %arg1[%c0, %c0_0] : memref<8x3xf32, #tpu.memory_space<vmem>>, vector<8x3xf32>
    %c0_1 = arith.constant 0 : index
    %c0_2 = arith.constant 0 : index
    %1 = vector.load %arg2[%c0_1, %c0_2] : memref<3x256xf32, #tpu.memory_space<vmem>>, vector<3x256xf32>
    %2 = vector.extract_strided_slice %0 {offsets = [0, 0], sizes = [8, 1], strides = [1, 1]} : vector<8x3xf32> to vector<8x1xf32>
    %3 = vector.extract_strided_slice %1 {offsets = [0, 0], sizes = [1, 256], strides = [1, 1]} : vector<3x256xf32> to vector<1x256xf32>
    %4 = vector.broadcast %2 : vector<8x1xf32> to vector<8x256xf32>
    %5 = vector.broadcast %3 : vector<1x256xf32> to vector<8x256xf32>
    %6 = arith.mulf %4, %5 : vector<8x256xf32>
    %7 = vector.extract_strided_slice %0 {offsets = [0, 1], sizes = [8, 1], strides = [1, 1]} : vector<8x3xf32> to vector<8x1xf32>
    %8 = vector.extract_strided_slice %1 {offsets = [1, 0], sizes = [1, 256], strides = [1, 1]} : vector<3x256xf32> to vector<1x256xf32>
    %9 = vector.broadcast %7 : vector<8x1xf32> to vector<8x256xf32>
    %10 = vector.broadcast %8 : vector<1x256xf32> to vector<8x256xf32>
    %11 = arith.mulf %9, %10 : vector<8x256xf32>
    %12 = arith.addf %6, %11 : vector<8x256xf32>
    %13 = vector.extract_strided_slice %0 {offsets = [0, 2], sizes = [8, 1], strides = [1, 1]} : vector<8x3xf32> to vector<8x1xf32>
    %14 = vector.extract_strided_slice %1 {offsets = [2, 0], sizes = [1, 256], strides = [1, 1]} : vector<3x256xf32> to vector<1x256xf32>
    %15 = vector.broadcast %13 : vector<8x1xf32> to vector<8x256xf32>
    %16 = vector.broadcast %14 : vector<1x256xf32> to vector<8x256xf32>
    %17 = arith.mulf %15, %16 : vector<8x256xf32>
    %18 = arith.addf %12, %17 : vector<8x256xf32>
    %c0_3 = arith.constant 0 : index
    %c0_4 = arith.constant 0 : index
    %19 = vector.load %arg3[%c0_3, %c0_4] : memref<1x256xf32, #tpu.memory_space<vmem>>, vector<1x256xf32>
    %20 = vector.broadcast %19 : vector<1x256xf32> to vector<8x256xf32>
    %21 = arith.addf %18, %20 : vector<8x256xf32>
    %cst = arith.constant 0.000000e+00 : f32
    %22 = vector.broadcast %cst : f32 to vector<8x256xf32>
    %23 = arith.maximumf %21, %22 : vector<8x256xf32>
    %24 = arith.truncf %23 : vector<8x256xf32> to vector<8x256xbf16>
    %c0_5 = arith.constant 0 : index
    %c0_6 = arith.constant 0 : index
    %25 = vector.load %arg4[%c0_5, %c0_6] : memref<256x256xbf16, #tpu.memory_space<vmem>>, vector<256x256xbf16>
    %cst_7 = arith.constant dense<0.000000e+00> : vector<8x256xf32>
    %26 = tpu.matmul %24, %25, %cst_7 {dimension_numbers = #tpu.dot_dimension_numbers<[1], [0], [0], [1], [0, 0, 1, 1], [], []>} : vector<8x256xbf16>, vector<256x256xbf16>, vector<8x256xf32> -> vector<8x256xf32>
    %c0_8 = arith.constant 0 : index
    %c0_9 = arith.constant 0 : index
    %27 = vector.load %arg5[%c0_8, %c0_9] : memref<1x256xf32, #tpu.memory_space<vmem>>, vector<1x256xf32>
    %28 = vector.broadcast %27 : vector<1x256xf32> to vector<8x256xf32>
    %29 = arith.addf %26, %28 : vector<8x256xf32>
    %cst_10 = arith.constant 0.000000e+00 : f32
    %30 = vector.broadcast %cst_10 : f32 to vector<8x256xf32>
    %31 = arith.maximumf %29, %30 : vector<8x256xf32>
    %c0_11 = arith.constant 0 : index
    %c0_12 = arith.constant 0 : index
    %32 = vector.load %arg6[%c0_11, %c0_12] : memref<1x256xf32, #tpu.memory_space<vmem>>, vector<1x256xf32>
    %33 = vector.broadcast %32 : vector<1x256xf32> to vector<8x256xf32>
    %34 = arith.mulf %31, %33 : vector<8x256xf32>
    %cst_13 = arith.constant dense<0.000000e+00> : vector<8xf32>
    %35 = vector.multi_reduction <add>, %34, %cst_13 [1] : vector<8x256xf32> to vector<8xf32>
    %36 = vector.shape_cast %35 : vector<8xf32> to vector<8x1xf32>
    %c0_14 = arith.constant 0 : index
    %c0_15 = arith.constant 0 : index
    %37 = memref.load %arg7[%c0_14, %c0_15] : memref<1x1xf32, #tpu.memory_space<smem>>
    %38 = vector.broadcast %37 : f32 to vector<8x1xf32>
    %39 = arith.addf %36, %38 : vector<8x1xf32>
    %40 = math.tanh %39 : vector<8x1xf32>
    %cst_16 = arith.constant 2.000000e+00 : f32
    %41 = vector.broadcast %cst_16 : f32 to vector<8x1xf32>
    %42 = arith.mulf %40, %41 : vector<8x1xf32>
    %c0_17 = arith.constant 0 : index
    %c0_18 = arith.constant 0 : index
    %43 = vector.load %arg8[%c0_17, %c0_18] : memref<8x1xf32, #tpu.memory_space<vmem>>, vector<8x1xf32>
    tpu.vector_store %arg8[%c0_17, %c0_18], %42 {strides = array<i32>} : memref<8x1xf32, #tpu.memory_space<vmem>>, vector<8x1xf32>,
    return
  }
  func.func @transform_0(%arg0: i32) -> (i32, i32) {
    %c0_i32 = arith.constant 0 : i32
    %c0_i32_0 = arith.constant 0 : i32
    return %arg0, %c0_i32 : i32, i32
  }
  func.func @transform_1(%arg0: i32) -> (i32, i32) {
    %c0_i32 = arith.constant 0 : i32
    %c0_i32_0 = arith.constant 0 : i32
    %c0_i32_1 = arith.constant 0 : i32
    return %c0_i32, %c0_i32_0 : i32, i32
  }
  func.func @transform_2(%arg0: i32) -> (i32, i32) {
    %c0_i32 = arith.constant 0 : i32
    %c0_i32_0 = arith.constant 0 : i32
    %c0_i32_1 = arith.constant 0 : i32
    return %c0_i32, %c0_i32_0 : i32, i32
  }
  func.func @transform_3(%arg0: i32) -> (i32, i32) {
    %c0_i32 = arith.constant 0 : i32
    %c0_i32_0 = arith.constant 0 : i32
    %c0_i32_1 = arith.constant 0 : i32
    return %c0_i32, %c0_i32_0 : i32, i32
  }
  func.func @transform_4(%arg0: i32) -> (i32, i32) {
    %c0_i32 = arith.constant 0 : i32
    %c0_i32_0 = arith.constant 0 : i32
    %c0_i32_1 = arith.constant 0 : i32
    return %c0_i32, %c0_i32_0 : i32, i32
  }
  func.func @transform_5(%arg0: i32) -> (i32, i32) {
    %c0_i32 = arith.constant 0 : i32
    %c0_i32_0 = arith.constant 0 : i32
    %c0_i32_1 = arith.constant 0 : i32
    return %c0_i32, %c0_i32_0 : i32, i32
  }
  func.func @transform_6(%arg0: i32) -> (i32, i32) {
    %c0_i32 = arith.constant 0 : i32
    %c0_i32_0 = arith.constant 0 : i32
    %c0_i32_1 = arith.constant 0 : i32
    return %c0_i32, %c0_i32_0 : i32, i32
  }
  func.func @transform_7(%arg0: i32) -> (i32, i32) {
    %c0_i32 = arith.constant 0 : i32
    %c0_i32_0 = arith.constant 0 : i32
    return %arg0, %c0_i32 : i32, i32
  }
}

</mosaic_0001>

<bundles_post_ra>
// kernel: tpu_custom_call.1
= control target key start
LH: loop header
LB: loop body
LE: loop exit
PB: predicated region body
PF: predicated region fallthrough
CT: control target
= control target key end

     0   :  { %13 = vsyncpa [#allocation4], 0  ;;  %s531_s24 = smov [#allocation3]   ;;  %s610_s0 = inlined_call_operand.vmem [shape: f32[8,3], index: 0, kind: input, shape index: {}]   ;;  %s611_s1 = inlined_call_operand.vmem [shape: f32[3,256], index: 1, kind: input, shape index: {}]   ;;  %s612_s2 = inlined_call_operand.vmem [shape: f32[1,256], index: 2, kind: input, shape index: {}]   ;;  %s613_s3 = inlined_call_operand.hbm [shape: bf16[256,256], index: 3, kind: input, shape index: {}]   ;;  %s614_s4 = inlined_call_operand.vmem [shape: f32[1,256], index: 4, kind: input, shape index: {}]   ;;  %s615_s5 = inlined_call_operand.vmem [shape: f32[1,256], index: 5, kind: input, shape index: {}]   ;;  %s616_s6 = inlined_call_operand.<no memory space> [shape: f32[1,1], index: 6, kind: input, shape index: {}]   ;;  %s617_s7 = inlined_call_operand.vmem [shape: f32[8,1], index: 7, kind: output, shape index: {}]  }
   0x1   :  { %s25_s25 = sshll.u32 %s531_s24, 4  ;;  %s507_s28 = scalar_lea.hbm %s613_s3, 4096  ;;  %s26_s25 = int_to_ptr.vmem [resolvable:$true] %s25_s25 }
   0x2   :  { %p508_p0 = scmp.ne.s32.totalorder %s613_s3, %s507_s28  ;;  %p511_p1 = scmp.lt.u32.totalorder %s507_s28, %s613_s3 }
   0x4   :  { %p513_p2 = pnand %p511_p1, %p508_p0 }
   0x6   :  { %516 = shalt.err (!%p513_p2)
}
   0x7   :  { %s517_s10 = scalar_lea.vmem %s26_s25, 4096  ;;  %p522_p4 = scmp.lt.s32.totalorder %s26_s25, %s26_s25 }
   0x8   :  { %p518_p3 = scmp.ne.s32.totalorder %s26_s25, %s517_s10  ;;  %p523_p5 = scmp.lt.s32.totalorder %s517_s10, %s517_s10 }
   0xa   :  { %p524_p6 = por %p523_p5, %p522_p4 }
   0xc   :  { %p525_p7 = pnand %p524_p6, %p518_p3 }
   0xe   :  { %528 = shalt.err (!%p525_p7)
}
   0xf   :  { %s532_s11 = smov 128   ;;  %s533_s12 = smov 8  }
  0x10   :  { %31 = dma.hbm_to_vmem [thread:$0]  %s613_s3, 4096, %s26_s25, [#allocation4], %s532_s11, %s532_s11, %s533_s12  }
  0x11   :  { %529 = dma.done.wait [#allocation4], 4096  }
  0x12   :  { %530 = vsyncadd [#allocation4], 4294963200  ;;  %v534_v0 = vmov 0   ;;  %v535_v1 = vmov 2   ;;  %v41_v2 = vld [vmem:[%s610_s0] sm:$0xff]  ;;  %v536_v7 = vmov 1   ;;  %v49_v36 = vlaneseq }
  0x13   :  { %453 = vset.pattern.permute.xlu0 %v534_v0  ;;  %455 = vset.pattern.permute.xlu1 %v535_v1  ;;  %v457_v3 = vld [vmem:[#allocation3 + $0x4] ss:$8 sps:$4 sm:$0xff]   ;;  %v459_v4 = vld [vmem:[#allocation3] ss:$8 sps:$4 sm:$0xff]   ;;  %v460_v5 = vld [vmem:[#allocation3 + $0x14] ss:$8 sps:$4 sm:$0xff]  }
  0x14   :  { %45 = vperm.xlu0 %453, %v41_v2   ;;  %96 = vperm.xlu1 %455, %v41_v2   ;;  %v462_v6 = vld [vmem:[#allocation3 + $0x10] ss:$8 sps:$4 sm:$0xff]   ;;  %v463_v8 = vld [vmem:[#allocation3 + $0x24] ss:$8 sps:$4 sm:$0xff]   ;;  %v465_v9 = vld [vmem:[#allocation3 + $0x20] ss:$8 sps:$4 sm:$0xff]  }
  0x15   :  { %343 = vmatprep.subr.bf16.mxu0 %v457_v3  ;;  %v466_v10 = vld [vmem:[#allocation3 + $0x34] ss:$8 sps:$4 sm:$0xff]   ;;  %v468_v11 = vld [vmem:[#allocation3 + $0x30] ss:$8 sps:$4 sm:$0xff]   ;;  %v469_v12 = vld [vmem:[#allocation3 + $0x44] ss:$8 sps:$4 sm:$0xff]  }
  0x16   :  { %344 = vmatpush1.bf16.msra.mxu0 %v459_v4  ;;  %v471_v13 = vld [vmem:[#allocation3 + $0x40] ss:$8 sps:$4 sm:$0xff]   ;;  %v472_v14 = vld [vmem:[#allocation3 + $0x54] ss:$8 sps:$4 sm:$0xff]   ;;  %v474_v15 = vld [vmem:[#allocation3 + $0x50] ss:$8 sps:$4 sm:$0xff]  }
  0x17   :  { %345 = vmatprep.subr.bf16.mxu0 %v460_v5  ;;  %v475_v16 = vld [vmem:[#allocation3 + $0x64] ss:$8 sps:$4 sm:$0xff]   ;;  %v477_v17 = vld [vmem:[#allocation3 + $0x60] ss:$8 sps:$4 sm:$0xff]   ;;  %v478_v18 = vld [vmem:[#allocation3 + $0x74] ss:$8 sps:$4 sm:$0xff]  }
  0x18   :  { %454 = vset.pattern.permute.xlu0 %v536_v7  ;;  %v480_v19 = vld [vmem:[#allocation3 + $0x70] ss:$8 sps:$4 sm:$0xff]   ;;  %v481_v20 = vld [vmem:[#allocation3 + $0x84] ss:$8 sps:$4 sm:$0xff]   ;;  %v483_v21 = vld [vmem:[#allocation3 + $0x80] ss:$8 sps:$4 sm:$0xff]  }
  0x19   :  { %70 = vperm.xlu0 %454, %v41_v2   ;;  %v484_v22 = vld [vmem:[#allocation3 + $0x94] ss:$8 sps:$4 sm:$0xff]   ;;  %v486_v23 = vld [vmem:[#allocation3 + $0x90] ss:$8 sps:$4 sm:$0xff]   ;;  %v487_v24 = vld [vmem:[#allocation3 + $0xa4] ss:$8 sps:$4 sm:$0xff]  }
  0x1a   :  { %346 = vmatpush1.bf16.msra.mxu0 %v462_v6  ;;  %v489_v25 = vld [vmem:[#allocation3 + $0xa0] ss:$8 sps:$4 sm:$0xff]   ;;  %v490_v26 = vld [vmem:[#allocation3 + $0xb4] ss:$8 sps:$4 sm:$0xff]   ;;  %v492_v27 = vld [vmem:[#allocation3 + $0xb0] ss:$8 sps:$4 sm:$0xff]  }
  0x1b   :  { %347 = vmatprep.subr.bf16.mxu0 %v463_v8  ;;  %v493_v28 = vld [vmem:[#allocation3 + $0xc4] ss:$8 sps:$4 sm:$0xff]   ;;  %v495_v29 = vld [vmem:[#allocation3 + $0xc0] ss:$8 sps:$4 sm:$0xff]   ;;  %v496_v30 = vld [vmem:[#allocation3 + $0xd4] ss:$8 sps:$4 sm:$0xff]  }
  0x1c   :  { %v498_v31 = vld [vmem:[#allocation3 + $0xd0] ss:$8 sps:$4 sm:$0xff]   ;;  %v499_v32 = vld [vmem:[#allocation3 + $0xe4] ss:$8 sps:$4 sm:$0xff]   ;;  %v501_v33 = vld [vmem:[#allocation3 + $0xe0] ss:$8 sps:$4 sm:$0xff]  }
  0x1d   :  { %456 = vset.pattern.permute.xlu0 %v535_v1  ;;  %v502_v34 = vld [vmem:[#allocation3 + $0xf4] ss:$8 sps:$4 sm:$0xff]   ;;  %v504_v35 = vld [vmem:[#allocation3 + $0xf0] ss:$8 sps:$4 sm:$0xff]   ;;  %v50_v37 = vshrl.u32 %v49_v36, 7  ;;  %vm408_vm0 = vcmask 7168  }
  0x1e   :  { %348 = vmatpush1.bf16.msra.mxu0 %v465_v9  ;;  %v42_v40 = vld [vmem:[%s611_s1] sm:$0x77] }
  0x1f   :  { %349 = vmatprep.subr.bf16.mxu0 %v466_v10  ;;  %v51_v38 = vsub.s32 0, %v50_v37  ;;  %v55_v39 = vsub.s32 4, %v50_v37  ;;  %v75_v41 = vsub.s32 1, %v50_v37  ;;  %v79_v42 = vsub.s32 5, %v50_v37  ;;  %v121_v62 = vld [vmem:[%s612_s2] sm:$0x3] }
  0x20   :  { %v101_v43 = vsub.s32 2, %v50_v37  ;;  %v105_v44 = vsub.s32 6, %v50_v37 }
  0x21   :  { %v52_v45 = vrot.slane %v42_v40, %v51_v38  ;;  %v56_v46 = vrot.slane %v42_v40, %v55_v39  ;;  %v76_v47 = vrot.slane %v42_v40, %v75_v41  ;;  %v80_v48 = vrot.slane %v42_v40, %v79_v42 }
  0x22   :  { %350 = vmatpush1.bf16.msra.mxu0 %v468_v11  ;;  %v102_v49 = vrot.slane %v42_v40, %v101_v43  ;;  %v106_v50 = vrot.slane %v42_v40, %v105_v44  ;;  %v126_v5 = vrot.slane %v121_v62, %v51_v38  ;;  %v130_v6 = vrot.slane %v121_v62, %v75_v41 }
  0x23   :  { %351 = vmatprep.subr.bf16.mxu0 %v469_v12  ;;  %v62_v52 = vrot.slane %v52_v45, %v51_v38  ;;  %v66_v53 = vrot.slane %v56_v46, %v51_v38  ;;  %v86_v54 = vrot.slane %v76_v47, %v75_v41  ;;  %v90_v55 = vrot.slane %v80_v48, %v75_v41 }
  0x24   :  { %v112_v56 = vrot.slane %v102_v49, %v101_v43  ;;  %v116_v57 = vrot.slane %v106_v50, %v101_v43 }
  0x26   :  { %352 = vmatpush1.bf16.msra.mxu0 %v471_v13 }
  0x27   :  { %353 = vmatprep.subr.bf16.mxu0 %v472_v14 }
  0x2a   :  { %354 = vmatpush1.bf16.msra.mxu0 %v474_v15  ;;  %v171_v15 = vld [vmem:[%s614_s4] sm:$0x3] }
  0x2b   :  { %355 = vmatprep.subr.bf16.mxu0 %v475_v16  ;;  %v176_v16 = vrot.slane %v171_v15, %v51_v38 }
  0x2e   :  { %356 = vmatpush1.bf16.msra.mxu0 %v477_v17  ;;  %v386_v17 = vld [vmem:[%s615_s5] sm:$0x3] }
  0x2f   :  { %357 = vmatprep.subr.bf16.mxu0 %v478_v18  ;;  %v180_v18 = vrot.slane %v171_v15, %v75_v41 }
  0x32   :  { %358 = vmatpush1.bf16.msra.mxu0 %v480_v19 }
  0x33   :  { %359 = vmatprep.subr.bf16.mxu0 %v481_v20 }
  0x36   :  { %360 = vmatpush1.bf16.msra.mxu0 %v483_v21  ;;  %v391_v21 = vrot.slane %v386_v17, %v51_v38 }
  0x37   :  { %361 = vmatprep.subr.bf16.mxu0 %v484_v22 }
  0x3a   :  { %362 = vmatpush1.bf16.msra.mxu0 %v486_v23 }
  0x3b   :  { %363 = vmatprep.subr.bf16.mxu0 %v487_v24  ;;  %v395_v24 = vrot.slane %v386_v17, %v75_v41 }
  0x3e   :  { %364 = vmatpush1.bf16.msra.mxu0 %v489_v25 }
  0x3f   :  { %365 = vmatprep.subr.bf16.mxu0 %v490_v26 }
  0x42   :  { %366 = vmatpush1.bf16.msra.mxu0 %v492_v27 }
  0x43   :  { %367 = vmatprep.subr.bf16.mxu0 %v493_v28 }
  0x46   :  { %368 = vmatpush1.bf16.msra.mxu0 %v495_v29 }
  0x47   :  { %369 = vmatprep.subr.bf16.mxu0 %v496_v30 }
  0x4a   :  { %370 = vmatpush1.bf16.msra.mxu0 %v498_v31 }
  0x4b   :  { %371 = vmatprep.subr.bf16.mxu0 %v499_v32  ;;  %v404_v32 = vstv %s616_s6 }
  0x4e   :  { %372 = vmatpush1.bf16.msra.mxu0 %v501_v33 }
  0x4f   :  { %373 = vmatprep.subr.bf16.mxu0 %v502_v34 }
  0x52   :  { %374 = vmatpush1.bf16.msra.mxu0 %v504_v35 }
  0x93   :  { %v46_v51 = vpop.permute.xlu0 %45  ;;  %v97_v58 = vpop.permute.xlu1 %96 }
  0x94   :  { %v67_v59 = vmul.f32 %v62_v52, %v46_v51  ;;  %v68_v60 = vmul.f32 %v66_v53, %v46_v51  ;;  %v117_v1 = vmul.f32 %v112_v56, %v97_v58  ;;  %v118_v2 = vmul.f32 %v116_v57, %v97_v58 }
  0x98   :  { %v71_v61 = vpop.permute.xlu0 %70 }
  0x99   :  { %v91_v63 = vmul.f32 %v86_v54, %v71_v61  ;;  %v92_v0 = vmul.f32 %v90_v55, %v71_v61 }
  0x9b   :  { %v93_v3 = vadd.f32 %v91_v63, %v67_v59  ;;  %v94_v4 = vadd.f32 %v92_v0, %v68_v60 }
  0x9d   :  { %v119_v7 = vadd.f32 %v117_v1, %v93_v3  ;;  %v120_v8 = vadd.f32 %v118_v2, %v94_v4 }
  0x9f   :  { %v134_v9 = vadd.f32 %v130_v6, %v120_v8  ;;  %v133_v10 = vadd.f32 %v126_v5, %v119_v7 }
  0xa1   :  { %v136_v11 = vmax.f32 %v134_v9, 0.0  ;;  %v135_v12 = vmax.f32 %v133_v10, 0.0 }
  0xa3   :  { %v138_v13 = vpack.c.bf16 %v136_v11, %v136_v11  ;;  %v137_v14 = vpack.c.bf16 %v135_v12, %v135_v12 }
  0xa5   :  { %375 = vmatprep.mubr.bf16.mxu0 %v138_v13 }
  0xa6   :  { %376 = vmatmul.mubr.bf16.vlgmr.msra.gmra.mrb[0].mxu0 %v137_v14 }
 0x179   :  { %v377_v19 = vpop.f32.mrb[0].mxu0 }
 0x17a   :  { %v378_v20 = vadd.f32 %v377_v19, %v176_v16  ;;  %v379_v22 = vpop.f32.mrb[1].mxu0 }
 0x17b   :  { %v380_v23 = vadd.f32 %v379_v22, %v180_v18  ;;  %v381_v25 = vpop.f32.mrb[2].mxu0 }
 0x17c   :  { %v384_v26 = vmax.f32 %v378_v20, 0.0  ;;  %v382_v27 = vpop.f32.mrb[3].mxu0 }
 0x17d   :  { %v385_v28 = vmax.f32 %v380_v23, 0.0 }
 0x17e   :  { %v398_v29 = vmul.f32 %v391_v21, %v384_v26 }
 0x17f   :  { %v399_v30 = vmul.f32 %v395_v24, %v385_v28 }
 0x181   :  { %v400_v31 = vadd.f32 %v399_v30, %v398_v29 }
 0x183   :  { %401 = vadd.xlane.f32.xlu1 %v400_v31 }
 0x210   :  { %v402_v33 = vpop.xlane.xlu1 %401 }
 0x211   :  { %v405_v34 = vadd.f32 %v404_v32, %v402_v33 }
 0x213   :  { %505 = vtanh.f32 %v405_v34 }
 0x21d   :  { %v506_v35 = vpop.eup %505 }
 0x21e   :  { %v407_v36 = vmul.f32 2.0, %v506_v35 }
 0x220   :  { %409 = vst.msk [vmem:[%s617_s7] sm:$0xff] %vm408_vm0, %v407_v36 }
 0x221   :  { %414 = vsyncpa [#allocation4], 1 }

</bundles_post_ra>
